<compile_context>
chip_gen: v5e
topology: v5e:2x2
jax: 0.10.0
libtpu: 0.0.40
codegen_flags: <defaults>
</compile_context>

<pallas_src>
import math

import jax
import jax.numpy as jnp
from jax import lax
from jax.experimental import pallas as pl
from jax.experimental.pallas import tpu as pltpu


# -----------------------------------------------------------------------------
# Pallas kernel: one (out-column tile, batch tile, k tile) block of the pooler.
# -----------------------------------------------------------------------------
def _pooler_kernel(x_ref, w_ref, b_ref, o_ref, acc_ref):
    # x_ref:   (TB, TK)  first-token activations
    # w_ref:   (TN, TK)  weight in native nn.Linear (out, in) layout
    # b_ref:   (1, TN)   bias slab
    # o_ref:   (TB, TN)  output block
    # acc_ref: (TB, TN)  f32 accumulator scratch (persists across k steps)
    k = pl.program_id(2)

    @pl.when(k == 0)
    def _():
        acc_ref[...] = jnp.zeros_like(acc_ref)

    # x @ w.T on the MXU (contract the shared `in` axis), f32 accumulation.
    acc_ref[...] += lax.dot_general(
        x_ref[...], w_ref[...],
        dimension_numbers=(((1,), (1,)), ((), ())),
        preferred_element_type=jnp.float32,
    )

    @pl.when(k == pl.num_programs(2) - 1)
    def _():
        y = acc_ref[...] + b_ref[...].astype(jnp.float32)   # VPU
        o_ref[...] = jnp.tanh(y).astype(o_ref.dtype)         # EUP


# -----------------------------------------------------------------------------
# Tile selection helpers
# -----------------------------------------------------------------------------
def _vmem_capacity_bytes():
    try:
        info = pltpu.get_tpu_info()
        return int(getattr(info, "vmem_capacity_bytes", 64 * 1024 * 1024))
    except Exception:
        return 64 * 1024 * 1024


def _pick_tile(dim, cap, align):
    """Largest tile <= cap (walking down by powers of two from cap) that divides
    dim; falls back to the full dim, which always satisfies the full-dim rule."""
    if dim <= cap:
        return dim
    t = cap
    while t >= align:
        if dim % t == 0:
            return t
        t //= 2
    return dim


def _pick_tk(e_in, tb, tn, in_bytes, out_bytes, budget):
    """Largest K tile (divisor of e_in, multiple of 128 when < e_in) whose
    double-buffered VMEM footprint fits the budget."""
    def footprint(tk):
        return (2 * tb * tk * in_bytes        # x, double-buffered
                + 2 * tn * tk * in_bytes      # weight, double-buffered
                + 2 * tb * tn * out_bytes     # output, double-buffered
                + tb * tn * 4                 # f32 accumulator scratch
                + 2 * tn * 4)                 # bias
    tk = e_in
    while (footprint(tk) > budget and tk % 2 == 0
           and (tk // 2) % 128 == 0 and e_in % (tk // 2) == 0):
        tk //= 2
    return tk


# -----------------------------------------------------------------------------
# Wrapper (the forward pass)
# -----------------------------------------------------------------------------
def lm_base_pooler(hidden_states, weight, bias):
    """hidden_states: (B, S, E); weight: (E, E) nn.Linear weight (out, in);
    bias: (E,).  Returns (B, E) == tanh(hidden_states[:, 0] @ weight.T + bias)."""
    B, S, E = hidden_states.shape
    e_out, e_in = weight.shape
    assert e_in == E and e_out == E

    # First-token rows only: B*E elements, negligible next to the E^2 weight
    # stream; keeps every BlockSpec within the (8,128)-or-full-dim rule.
    x0 = hidden_states[:, 0, :]                       # (B, E)
    b2 = bias.reshape(1, e_out)                       # (1, E)

    in_bytes = jnp.dtype(hidden_states.dtype).itemsize
    out_bytes = in_bytes
    sublane = max(8, 32 // in_bytes)                  # 8 f32 / 16 bf16 / 32 int8

    vmem_cap = _vmem_capacity_bytes()
    vmem_limit = min(int(0.75 * vmem_cap), 100 * 1024 * 1024)
    budget = int(0.8 * vmem_limit)

    tb = _pick_tile(B, 256, sublane)                  # batch rows per step
    tn_cap = 1024 if vmem_cap >= (100 << 20) else 512 # bigger slabs on 128MiB chips
    tn = _pick_tile(e_out, tn_cap, 128)               # output columns (lane-dense)
    # v7x has 2 TensorCores: ensure at least one "parallel" axis has >1 step.
    if B // tb == 1 and e_out // tn == 1 and e_out % 256 == 0:
        tn = e_out // 2
    tk = _pick_tk(e_in, tb, tn, in_bytes, out_bytes, budget)

    grid = (e_out // tn, B // tb, e_in // tk)         # column outer, batch, k inner

    out = pl.pallas_call(
        _pooler_kernel,
        out_shape=jax.ShapeDtypeStruct((B, e_out), hidden_states.dtype),
        grid_spec=pltpu.PrefetchScalarGridSpec(
            num_scalar_prefetch=0,
            grid=grid,
            in_specs=[
                pl.BlockSpec((tb, tk), lambda j, i, k: (i, k)),  # first-token acts
                pl.BlockSpec((tn, tk), lambda j, i, k: (j, k)),  # native (out,in) weight
                pl.BlockSpec((1, tn), lambda j, i, k: (0, j)),   # bias columns
            ],
            out_specs=pl.BlockSpec((tb, tn), lambda j, i, k: (i, j)),
            scratch_shapes=[pltpu.VMEM((tb, tn), jnp.float32)],
        ),
        compiler_params=pltpu.CompilerParams(
            dimension_semantics=("parallel", "parallel", "arbitrary"),
            vmem_limit_bytes=vmem_limit,
        ),
    )(x0, weight, b2)
    return out


# -----------------------------------------------------------------------------
# Pure-JAX reference (mirrors the PyTorch forward) for verification.
# -----------------------------------------------------------------------------
def _reference(hidden_states, weight, bias):
    first = hidden_states[:, 0]                       # (B, E)
    return jnp.tanh(first @ weight.T + bias)          # nn.Linear + Tanh


# -----------------------------------------------------------------------------
if __name__ == "__main__":
    B, S, E = 2, 8, 32
    key = jax.random.PRNGKey(0)
    k_x, k_w, k_b = jax.random.split(key, 3)

    hidden = jax.random.normal(k_x, (B, S, E), dtype=jnp.float32)
    # nn.Linear layout: weight (out_features, in_features), bias (out_features,)
    weight = jax.random.normal(k_w, (E, E), dtype=jnp.float32) / math.sqrt(E)
    bias = jax.random.normal(k_b, (E,), dtype=jnp.float32) * 0.1

    out = lm_base_pooler(hidden, weight, bias)
    out = jax.block_until_ready(out)

    ref = _reference(hidden, weight, bias)
    assert out.shape == (B, E)
    assert jnp.allclose(out, ref, atol=1e-4, rtol=1e-4), (
        f"max abs err {jnp.max(jnp.abs(out - ref))}")

    print("KERNEL_OK")
</pallas_src>

<mosaic_0001>
module attributes {stable_mosaic.version = 11 : i64} {
  func.func @_pooler_kernel(%arg0: i32, %arg1: i32, %arg2: i32, %arg3: memref<2x32xf32, #tpu.memory_space<vmem>>, %arg4: memref<32x32xf32, #tpu.memory_space<vmem>>, %arg5: memref<1x32xf32, #tpu.memory_space<vmem>>, %arg6: memref<2x32xf32, #tpu.memory_space<vmem>>, %arg7: memref<2x32xf32, #tpu.memory_space<vmem>>) attributes {dimension_semantics = [#tpu.dimension_semantics<parallel>, #tpu.dimension_semantics<parallel>, #tpu.dimension_semantics<arbitrary>], iteration_bounds = array<i64: 1, 1, 1>, scalar_prefetch = 0 : i64, scratch_operands = 1 : i64, tpu.core_type = #tpu.core_type<tc>, window_params = [{transform_indices = @transform_0, window_bounds = array<i64: 2, 32>}, {transform_indices = @transform_1, window_bounds = array<i64: 32, 32>}, {transform_indices = @transform_2, window_bounds = array<i64: 1, 32>}, {transform_indices = @transform_3, window_bounds = array<i64: 2, 32>}]} {
    %c0_i32 = arith.constant 0 : i32
    %0 = arith.cmpi eq, %arg2, %c0_i32 : i32
    %1 = arith.extui %0 : i1 to i32
    %c0_i32_0 = arith.constant 0 : i32
    %2 = arith.cmpi ne, %1, %c0_i32_0 : i32
    scf.if %2 {
      %cst_10 = arith.constant 0.000000e+00 : f32
      %12 = vector.broadcast %cst_10 : f32 to vector<2x32xf32>
      %c0_11 = arith.constant 0 : index
      %c0_12 = arith.constant 0 : index
      %13 = vector.load %arg7[%c0_11, %c0_12] : memref<2x32xf32, #tpu.memory_space<vmem>>, vector<2x32xf32>
      tpu.vector_store %arg7[%c0_11, %c0_12], %12 {strides = array<i32>} : memref<2x32xf32, #tpu.memory_space<vmem>>, vector<2x32xf32>,
    } else {
    }
    %c0 = arith.constant 0 : index
    %c0_1 = arith.constant 0 : index
    %3 = vector.load %arg7[%c0, %c0_1] : memref<2x32xf32, #tpu.memory_space<vmem>>, vector<2x32xf32>
    %c0_2 = arith.constant 0 : index
    %c0_3 = arith.constant 0 : index
    %4 = vector.load %arg3[%c0_2, %c0_3] : memref<2x32xf32, #tpu.memory_space<vmem>>, vector<2x32xf32>
    %c0_4 = arith.constant 0 : index
    %c0_5 = arith.constant 0 : index
    %5 = vector.load %arg4[%c0_4, %c0_5] : memref<32x32xf32, #tpu.memory_space<vmem>>, vector<32x32xf32>
    %cst = arith.constant dense<0.000000e+00> : vector<2x32xf32>
    %6 = tpu.matmul %4, %5, %cst {dimension_numbers = #tpu.dot_dimension_numbers<[1], [1], [0], [0], [0, 0, 1, 0], [], []>} : vector<2x32xf32>, vector<32x32xf32>, vector<2x32xf32> -> vector<2x32xf32>
    %7 = arith.addf %3, %6 : vector<2x32xf32>
    %c0_6 = arith.constant 0 : index
    %c0_7 = arith.constant 0 : index
    %8 = vector.load %arg7[%c0_6, %c0_7] : memref<2x32xf32, #tpu.memory_space<vmem>>, vector<2x32xf32>
    tpu.vector_store %arg7[%c0_6, %c0_7], %7 {strides = array<i32>} : memref<2x32xf32, #tpu.memory_space<vmem>>, vector<2x32xf32>,
    %c0_i32_8 = arith.constant 0 : i32
    %9 = arith.cmpi eq, %arg2, %c0_i32_8 : i32
    %10 = arith.extui %9 : i1 to i32
    %c0_i32_9 = arith.constant 0 : i32
    %11 = arith.cmpi ne, %10, %c0_i32_9 : i32
    scf.if %11 {
      %c0_10 = arith.constant 0 : index
      %c0_11 = arith.constant 0 : index
      %12 = vector.load %arg7[%c0_10, %c0_11] : memref<2x32xf32, #tpu.memory_space<vmem>>, vector<2x32xf32>
      %c0_12 = arith.constant 0 : index
      %c0_13 = arith.constant 0 : index
      %13 = vector.load %arg5[%c0_12, %c0_13] : memref<1x32xf32, #tpu.memory_space<vmem>>, vector<1x32xf32>
      %14 = vector.broadcast %13 : vector<1x32xf32> to vector<2x32xf32>
      %15 = arith.addf %12, %14 : vector<2x32xf32>
      %16 = math.tanh %15 : vector<2x32xf32>
      %c0_14 = arith.constant 0 : index
      %c0_15 = arith.constant 0 : index
      %17 = vector.load %arg6[%c0_14, %c0_15] : memref<2x32xf32, #tpu.memory_space<vmem>>, vector<2x32xf32>
      tpu.vector_store %arg6[%c0_14, %c0_15], %16 {strides = array<i32>} : memref<2x32xf32, #tpu.memory_space<vmem>>, vector<2x32xf32>,
    } else {
    }
    return
  }
  func.func @transform_0(%arg0: i32, %arg1: i32, %arg2: i32) -> (i32, i32) {
    %c0_i32 = arith.constant 0 : i32
    return %arg1, %arg2 : i32, i32
  }
  func.func @transform_1(%arg0: i32, %arg1: i32, %arg2: i32) -> (i32, i32) {
    %c0_i32 = arith.constant 0 : i32
    return %arg0, %arg2 : i32, i32
  }
  func.func @transform_2(%arg0: i32, %arg1: i32, %arg2: i32) -> (i32, i32) {
    %c0_i32 = arith.constant 0 : i32
    %c0_i32_0 = arith.constant 0 : i32
    return %c0_i32, %arg0 : i32, i32
  }
  func.func @transform_3(%arg0: i32, %arg1: i32, %arg2: i32) -> (i32, i32) {
    %c0_i32 = arith.constant 0 : i32
    return %arg1, %arg0 : i32, i32
  }
}

</mosaic_0001>

<bundles_post_ra>
// kernel: tpu_custom_call.1
= control target key start
LH: loop header
LB: loop body
LE: loop exit
PB: predicated region body
PF: predicated region fallthrough
CT: control target
= control target key end

     0   :  { %8 = vsyncpa [#allocation4], 0  ;;  %s258_s0 = inlined_call_operand.hbm [shape: f32[2,32], index: 0, kind: input, shape index: {}]   ;;  %s259_s1 = inlined_call_operand.hbm [shape: f32[32,32], index: 1, kind: input, shape index: {}]   ;;  %s260_s2 = inlined_call_operand.vmem [shape: f32[1,32], index: 2, kind: input, shape index: {}]   ;;  %s261_s3 = inlined_call_operand.hbm [shape: f32[2,32], index: 3, kind: output, shape index: {}]  }
   0x1   :  { %9 = vsyncpa [#allocation7], 0 }
   0x2   :  { %10 = vsyncpa [#allocation5], 0  ;;  %s16_s14 = sshll.u32 %s258_s0, 4  ;;  %s217_s15 = smov [#allocation3]   ;;  %s17_s14 = int_to_ptr.hbm [resolvable:$true] %s16_s14 }
   0x3   :  { %s18_s16 = sshll.u32 %s217_s15, 4  ;;  %s26_s19 = sshll.u32 %s259_s1, 4  ;;  %s19_s16 = int_to_ptr.vmem [resolvable:$true] %s18_s16  ;;  %s27_s19 = int_to_ptr.hbm [resolvable:$true] %s26_s19 }
   0x4   :  { %21 = dma.hbm_to_vmem [thread:$0]  %s17_s14, 32, %s19_s16, [#allocation4]  }
   0x5   :  { %s218_s20 = smov [#allocation6]   ;;  %s219_s22 = smov 128  }
   0x6   :  { %s28_s21 = sshll.u32 %s218_s20, 4  ;;  %s220_s23 = smov 8   ;;  %s29_s21 = int_to_ptr.vmem [resolvable:$true] %s28_s21 }
   0x7   :  { %34 = dma.hbm_to_vmem [thread:$0]  %s27_s19, 512, %s29_s21, [#allocation7], %s219_s22, %s219_s22, %s220_s23  }
   0x8   :  { %211 = dma.done.wait [#allocation4], 32  }
   0x9   :  { %212 = vsyncadd [#allocation4], 4294967264 }
   0xa   :  { %213 = dma.done.wait [#allocation7], 512  }
   0xb   :  { %214 = vsyncadd [#allocation7], 4294966784  ;;  %vm49_vm0 = vcmask 254976   ;;  %v221_v0 = vmov 0.0   ;;  %vm57_vm1 = vcmask 261120   ;;  %v56_v1 = vld [vmem:[#allocation6 + $0x18] sm:$0xff] }
   0xc   :  { %50 = vst.msk [vmem:[#allocation2] sm:$0x3] %vm49_vm0, %v221_v0  ;;  %125 = vmatpush.xpose.msk.msra.mxu0 %vm57_vm1, %v56_v1  ;;  %v55_v2 = vld [vmem:[#allocation6 + $0x10] sm:$0xff]  ;;  %v54_v3 = vld [vmem:[#allocation6 + $0x8] sm:$0xff]  ;;  %v53_v4 = vld [vmem:[#allocation6] sm:$0xff]  ;;  %s222_s24 = smov [#allocation8]  }
   0xd   :  { %v52_v5 = vld [vmem:[#allocation3] sm:$0x3]  ;;  %v136_v9 = vld [vmem:[%s260_s2] ss:$0 sm:$0xff]  ;;  %s112_s25 = sshll.u32 %s222_s24, 4  ;;  %s114_s28 = sshll.u32 %s261_s3, 4  ;;  %s113_s25 = int_to_ptr.vmem [resolvable:$true] %s112_s25  ;;  %s115_s28 = int_to_ptr.hbm [resolvable:$true] %s114_s28 }
  0x10   :  { %126 = vmatpush.xpose.msk.msra.mxu0 %vm57_vm1, %v55_v2 }
  0x13   :  { %v51_v6 = vld [vmem:[#allocation2] sm:$0x3] }
  0x14   :  { %127 = vmatpush.xpose.msk.msra.mxu0 %vm57_vm1, %v54_v3 }
  0x18   :  { %128 = vmatpush.xpose.msk.msra.mxu0 %vm57_vm1, %v53_v4 }
  0x1b   :  { %129 = vmatmul.msk.f32.vlgmr.msra.gmra.mxu0 %vm57_vm1, %v52_v5 }
  0x98   :  { %v90_v7 = vpop.f32.mrf.mxu0 }
  0x99   :  { %v93_v8 = vadd.f32 %v90_v7, %v51_v6 }
  0x9b   :  { %95 = vst.msk [vmem:[#allocation2] sm:$0x3] %vm49_vm0, %v93_v8 }
  0xa2   :  { %v99_v10 = vld [vmem:[#allocation2] sm:$0x3] }
  0xa3   :  { %v104_v11 = vadd.f32 %v136_v9, %v99_v10 }
  0xa5   :  { %137 = vtanh.f32 %v104_v11 }
  0xab   :  { %v138_v12 = vpop.eup %137 }
  0xac   :  { %106 = vst.msk [vmem:[#allocation8] sm:$0x3] %vm49_vm0, %v138_v12 }
  0xad   :  { %117 = dma.vmem_to_hbm [thread:$0]  %s113_s25, 32, %s115_s28, [#allocation5]  }
  0xae   :  { %215 = dma.done.wait [#allocation5], 32  }
  0xaf   :  { %216 = vsyncadd [#allocation5], 4294967264 }
  0xb0   :  { %122 = vsyncpa [#allocation4], 1 }
  0xb1   :  { %123 = vsyncpa [#allocation7], 1 }
  0xb2   :  { %124 = vsyncpa [#allocation5], 1 }

</bundles_post_ra>
